<compile_context>
chip_gen: v7x
topology: tpu7x:2x2x1
jax: 0.10.0
libtpu: 0.0.40
codegen_flags: <defaults>
</compile_context>

<pallas_src>
import jax
import jax.numpy as jnp
from jax.experimental import pallas as pl
from jax.experimental.pallas import tpu as pltpu  # noqa: F401  (TPU backend assumed)

NUM_LABELS = 4


# --------------------------------------------------------------------------- #
# Kernel 1: pred = softmax(logits), entropy, pseudo_y = argmax(logits)         #
# --------------------------------------------------------------------------- #
def _pred_entropy_kernel(logits_ref, pred_ref, ent_ref, py_ref):
    logits = logits_ref[...].astype(jnp.float32)               # [B, C]
    B, C = logits.shape
    m = jnp.max(logits, axis=-1, keepdims=True)
    z = logits - m
    e = jnp.exp(z)
    s = jnp.sum(e, axis=-1, keepdims=True)
    pred = e / s                                               # softmax
    log_pred = z - jnp.log(s)                                  # log_softmax
    pred_ref[...] = pred
    ent_ref[...] = -jnp.sum(pred * log_pred, axis=-1, keepdims=True)
    # Fused argmax (first index attaining the max), avoids a separate XLA op on pred.
    lane = jax.lax.broadcasted_iota(jnp.int32, (B, C), 1)
    py_ref[...] = jnp.min(jnp.where(logits == m, lane, C), axis=-1, keepdims=True)


def pred_entropy_argmax(logits):
    B, C = logits.shape
    pred, ent, py = pl.pallas_call(
        _pred_entropy_kernel,
        grid=(1,),
        in_specs=[pl.BlockSpec((B, C), lambda i: (0, 0))],
        out_specs=[pl.BlockSpec((B, C), lambda i: (0, 0)),
                   pl.BlockSpec((B, 1), lambda i: (0, 0)),
                   pl.BlockSpec((B, 1), lambda i: (0, 0))],
        out_shape=[jax.ShapeDtypeStruct((B, C), jnp.float32),
                   jax.ShapeDtypeStruct((B, 1), jnp.float32),
                   jax.ShapeDtypeStruct((B, 1), jnp.int32)],
    )(logits)
    return pred, ent[:, 0], py[:, 0]


# --------------------------------------------------------------------------- #
# Kernel 2: memo similarities (pre-reduced over slots) -> memo_pred            #
#                                                                              #
#   ct[b, c]  = sum_d text[b, d] * memo_sum[c, d]        (memo_sum = sum_m memo)
#   dt        = (ct0 + ct2) - (ct1 + ct3)   -> text combine logit difference   #
#   dv        = (ct0 + ct1) - (ct2 + ct3)   -> "vision" combine (from text,    #
#                                              faithful to the reference)      #
#   mt = softmax([ct0+ct2, ct1+ct3]) == [sigmoid(dt), sigmoid(-dt)]            #
#   mv = softmax([ct0+ct1, ct2+ct3]) == [sigmoid(dv), sigmoid(-dv)]            #
#   memo_pred = [mt0*mv0, mt1*mv0, mt0*mv1, mt1*mv1]                            #
# --------------------------------------------------------------------------- #
def _sigmoid(x):
    return 1.0 / (1.0 + jnp.exp(-x))


def _memo_pred_kernel(text_ref, msum_ref, out_ref):
    text = text_ref[...].astype(jnp.float32)                   # [B, D]
    msum = msum_ref[...].astype(jnp.float32)                   # [L=4, D]
    B = text.shape[0]

    # Fold the class-combine into two D-wide weight vectors (VPU only).
    w_t = (msum[0:1, :] + msum[2:3, :]) - (msum[1:2, :] + msum[3:4, :])   # [1, D]
    w_v = (msum[0:1, :] + msum[1:2, :]) - (msum[2:3, :] + msum[3:4, :])   # [1, D]

    dt = jnp.sum(text * w_t, axis=-1, keepdims=True)           # [B, 1]
    dv = jnp.sum(text * w_v, axis=-1, keepdims=True)           # [B, 1]

    mt0 = _sigmoid(dt)                                         # == softmax(ctc)[:, 0]
    mt1 = _sigmoid(-dt)                                        # == softmax(ctc)[:, 1]
    mv0 = _sigmoid(dv)
    mv1 = _sigmoid(-dv)

    lane = jax.lax.broadcasted_iota(jnp.int32, (B, NUM_LABELS), 1)
    mt_sel = jnp.where((lane % 2) == 0, mt0, mt1)              # [B, 4]
    mv_sel = jnp.where(lane < 2, mv0, mv1)                     # [B, 4]
    out_ref[...] = mt_sel * mv_sel                             # memo_pred


def memo_pred_from_sum(text_embeds, memo_text_sum):
    B, D = text_embeds.shape
    L, _ = memo_text_sum.shape
    return pl.pallas_call(
        _memo_pred_kernel,
        grid=(1,),
        in_specs=[pl.BlockSpec((B, D), lambda i: (0, 0)),
                  pl.BlockSpec((L, D), lambda i: (0, 0))],
        out_specs=pl.BlockSpec((B, NUM_LABELS), lambda i: (0, 0)),
        out_shape=jax.ShapeDtypeStruct((B, NUM_LABELS), jnp.float32),
    )(text_embeds, memo_text_sum)


# --------------------------------------------------------------------------- #
# Memory write (glue, plain JAX, vmapped over labels): sorted merge of         #
# lowest-entropy samples into the per-label memo.                              #
# --------------------------------------------------------------------------- #
# TODO(synk): the data-dependent sort/merge with dynamic-size boolean selection has no
# clean Pallas equivalent; it is implemented functionally in JAX (the kept *set* of
# samples and the forward outputs match the PyTorch code exactly; only the slot order
# inside the embed buffers may differ, which is irrelevant because downstream use sums
# over the slot dimension).
def _write_memo_one(ent_row, mt_row, mv_row, p, sel,
                    text_embeds, vision_embeds, entropy):
    M = ent_row.shape[0]
    n_sel = jnp.sum(sel.astype(jnp.int32))
    memo_valid = jnp.arange(M) < p
    merged_vals = jnp.concatenate([
        jnp.where(memo_valid, ent_row, jnp.inf),
        jnp.where(sel, entropy, jnp.inf)])                     # [M + B]
    merged_text = jnp.concatenate([mt_row, text_embeds], axis=0)
    merged_vis = jnp.concatenate([mv_row, vision_embeds], axis=0)
    limit = jnp.minimum(M, p + n_sel)                          # fill_size
    order = jnp.argsort(merged_vals)[:M]                       # ascending entropy
    keep = jnp.arange(M) < limit
    new_ent = jnp.where(keep, merged_vals[order], ent_row)
    new_mt = jnp.where(keep[:, None], merged_text[order], mt_row)
    new_mv = jnp.where(keep[:, None], merged_vis[order], mv_row)
    return new_ent, new_mt, new_mv, limit


def write_memo(entropy_buf, memo_text, memo_vision, ptr,
               text_embeds, vision_embeds, pseudo_y, entropy):
    L = entropy_buf.shape[0]
    sel = pseudo_y[None, :] == jnp.arange(L, dtype=pseudo_y.dtype)[:, None]   # [L, B]
    new_ent, new_mt, new_mv, new_ptr = jax.vmap(
        _write_memo_one, in_axes=(0, 0, 0, 0, 0, None, None, None))(
        entropy_buf, memo_text, memo_vision, ptr, sel,
        text_embeds, vision_embeds, entropy)
    return new_ent, new_mt, new_mv, new_ptr.astype(ptr.dtype)


# --------------------------------------------------------------------------- #
# Full forward (backbone model outputs are taken as inputs)                    #
# --------------------------------------------------------------------------- #
def memo_enhanced_forward(logits, text_fused_embeds, vision_fused_embeds, state,
                          use_memo=True):
    pred, entropy, pseudo_y = pred_entropy_argmax(logits)
    if not use_memo:
        return pred, state
    entropy_buf, memo_text, memo_vision, ptr = state
    entropy_buf, memo_text, memo_vision, ptr = write_memo(
        entropy_buf, memo_text, memo_vision, ptr,
        text_fused_embeds, vision_fused_embeds, pseudo_y, entropy)
    # Pre-reduce the memo over the slot dimension (cheap plain-JAX reduce); kernel 2
    # only sees this [L, D] array instead of the full [L, M, D] memo.
    memo_text_sum = jnp.sum(memo_text, axis=1)                 # [L, D]
    memo_pred = memo_pred_from_sum(text_fused_embeds, memo_text_sum)
    new_state = (entropy_buf, memo_text, memo_vision, ptr)
    return (memo_pred, pred, entropy), new_state


# --------------------------------------------------------------------------- #
# Pure-jnp reference (mirrors the PyTorch forward) for a sanity check.         #
# --------------------------------------------------------------------------- #
def reference_forward(logits, text_embeds, vision_embeds, state):
    pred = jax.nn.softmax(logits, axis=-1)
    log_pred = jax.nn.log_softmax(logits, axis=-1)
    entropy = -jnp.sum(pred * log_pred, axis=-1)
    pseudo_y = jnp.argmax(pred, axis=-1)
    _, memo_text, _, _ = write_memo(*state, text_embeds, vision_embeds, pseudo_y, entropy)
    ct = jnp.einsum('bd,cmd->bmc', text_embeds, memo_text).sum(axis=1)
    ctc = jnp.stack([ct[:, 0] + ct[:, 2], ct[:, 1] + ct[:, 3]], axis=1)
    cvc = jnp.stack([ct[:, 0] + ct[:, 1], ct[:, 2] + ct[:, 3]], axis=1)
    mtp = jax.nn.softmax(ctc, axis=-1)
    mvp = jax.nn.softmax(cvc, axis=-1)
    memo_pred = jnp.concatenate([mtp * mvp[:, 0:1], mtp * mvp[:, 1:2]], axis=1)
    return memo_pred, pred, entropy, pseudo_y


if __name__ == "__main__":
    # Small shapes consistent with the module (memo_size=M, embed_size=D).
    B, D, M = 8, 128, 64
    key = jax.random.PRNGKey(0)
    k1, k2, k3 = jax.random.split(key, 3)
    logits = jax.random.normal(k1, (B, NUM_LABELS), dtype=jnp.float32)
    text_fused_embeds = jax.random.normal(k2, (B, D), dtype=jnp.float32)
    vision_fused_embeds = jax.random.normal(k3, (B, D), dtype=jnp.float32)

    # Buffers exactly as in __init__: zeros, ptr = 0.
    state = (jnp.zeros((NUM_LABELS, M), jnp.float32),        # entropy
             jnp.zeros((NUM_LABELS, M, D), jnp.float32),     # embed_memo_text
             jnp.zeros((NUM_LABELS, M, D), jnp.float32),     # embed_memo_vision
             jnp.zeros((NUM_LABELS,), jnp.int32))            # entropy_memo_ptr

    (memo_pred, pred, entropy), new_state = memo_enhanced_forward(
        logits, text_fused_embeds, vision_fused_embeds, state)
    jax.block_until_ready((memo_pred, pred, entropy, new_state))

    ref_memo_pred, ref_pred, ref_entropy, ref_pseudo_y = reference_forward(
        logits, text_fused_embeds, vision_fused_embeds, state)
    # Kernel-1 checks.
    assert jnp.allclose(pred, ref_pred, atol=1e-4, rtol=1e-4)
    assert jnp.allclose(entropy, ref_entropy, atol=1e-4, rtol=1e-4)
    # Fused argmax check.
    _, _, pseudo_y = pred_entropy_argmax(logits)
    assert jnp.array_equal(pseudo_y, ref_pseudo_y.astype(pseudo_y.dtype))
    # Kernel-2 (sigmoid reformulation + slot-sum hoist) check.
    assert jnp.allclose(memo_pred, ref_memo_pred, atol=1e-3, rtol=1e-3)

    print("KERNEL_OK")
</pallas_src>

<mosaic_0001>
module attributes {stable_mosaic.version = 11 : i64} {
  func.func @_pred_entropy_kernel(%arg0: i32, %arg1: memref<8x4xf32, #tpu.memory_space<vmem>>, %arg2: memref<8x4xf32, #tpu.memory_space<vmem>>, %arg3: memref<8x1xf32, #tpu.memory_space<vmem>>, %arg4: memref<8x1xi32, #tpu.memory_space<vmem>>) attributes {dimension_semantics = [#tpu.dimension_semantics<arbitrary>], iteration_bounds = array<i64: 1>, scalar_prefetch = 0 : i64, scratch_operands = 0 : i64, tpu.core_type = #tpu.core_type<tc>, window_params = [{pipeline_mode = #tpu.pipeline_mode<synchronous>, transform_indices = @transform_0, window_bounds = array<i64: 8, 4>}, {pipeline_mode = #tpu.pipeline_mode<synchronous>, transform_indices = @transform_1, window_bounds = array<i64: 8, 4>}, {pipeline_mode = #tpu.pipeline_mode<synchronous>, transform_indices = @transform_2, window_bounds = array<i64: 8, 1>}, {pipeline_mode = #tpu.pipeline_mode<synchronous>, transform_indices = @transform_3, window_bounds = array<i64: 8, 1>}]} {
    %c0 = arith.constant 0 : index
    %c0_0 = arith.constant 0 : index
    %0 = vector.load %arg1[%c0, %c0_0] : memref<8x4xf32, #tpu.memory_space<vmem>>, vector<8x4xf32>
    %cst = arith.constant dense<0xFF800000> : vector<8xf32>
    %1 = vector.multi_reduction <maximumf>, %0, %cst [1] : vector<8x4xf32> to vector<8xf32>
    %2 = vector.shape_cast %1 : vector<8xf32> to vector<8x1xf32>
    %3 = vector.broadcast %2 : vector<8x1xf32> to vector<8x4xf32>
    %4 = arith.subf %0, %3 : vector<8x4xf32>
    %5 = math.exp %4 : vector<8x4xf32>
    %cst_1 = arith.constant dense<0.000000e+00> : vector<8xf32>
    %6 = vector.multi_reduction <add>, %5, %cst_1 [1] : vector<8x4xf32> to vector<8xf32>
    %7 = vector.shape_cast %6 : vector<8xf32> to vector<8x1xf32>
    %8 = vector.broadcast %7 : vector<8x1xf32> to vector<8x4xf32>
    %9 = arith.divf %5, %8 : vector<8x4xf32>
    %10 = math.log %7 : vector<8x1xf32>
    %11 = vector.broadcast %10 : vector<8x1xf32> to vector<8x4xf32>
    %12 = arith.subf %4, %11 : vector<8x4xf32>
    %c0_2 = arith.constant 0 : index
    %c0_3 = arith.constant 0 : index
    %13 = vector.load %arg2[%c0_2, %c0_3] : memref<8x4xf32, #tpu.memory_space<vmem>>, vector<8x4xf32>
    tpu.vector_store %arg2[%c0_2, %c0_3], %9 {strides = array<i32>} : memref<8x4xf32, #tpu.memory_space<vmem>>, vector<8x4xf32>,
    %14 = arith.mulf %9, %12 : vector<8x4xf32>
    %cst_4 = arith.constant dense<0.000000e+00> : vector<8xf32>
    %15 = vector.multi_reduction <add>, %14, %cst_4 [1] : vector<8x4xf32> to vector<8xf32>
    %16 = vector.shape_cast %15 : vector<8xf32> to vector<8x1xf32>
    %cst_5 = arith.constant 0.000000e+00 : f32
    %17 = vector.broadcast %cst_5 : f32 to vector<8x1xf32>
    %18 = arith.subf %17, %16 : vector<8x1xf32>
    %c0_6 = arith.constant 0 : index
    %c0_7 = arith.constant 0 : index
    %19 = vector.load %arg3[%c0_6, %c0_7] : memref<8x1xf32, #tpu.memory_space<vmem>>, vector<8x1xf32>
    tpu.vector_store %arg3[%c0_6, %c0_7], %18 {strides = array<i32>} : memref<8x1xf32, #tpu.memory_space<vmem>>, vector<8x1xf32>,
    %20 = tpu.iota {dimensions = array<i32: 1>} : vector<8x4xi32>
    %21 = vector.broadcast %2 : vector<8x1xf32> to vector<8x4xf32>
    %22 = arith.cmpf oeq, %0, %21 : vector<8x4xf32>
    %c4_i32 = arith.constant 4 : i32
    %23 = vector.broadcast %c4_i32 : i32 to vector<8x4xi32>
    %24 = arith.select %22, %20, %23 : vector<8x4xi1>, vector<8x4xi32>
    %cst_8 = arith.constant dense<2147483647> : vector<8xi32>
    %25 = vector.multi_reduction <minsi>, %24, %cst_8 [1] : vector<8x4xi32> to vector<8xi32>
    %26 = vector.shape_cast %25 : vector<8xi32> to vector<8x1xi32>
    %c0_9 = arith.constant 0 : index
    %c0_10 = arith.constant 0 : index
    %27 = vector.load %arg4[%c0_9, %c0_10] : memref<8x1xi32, #tpu.memory_space<vmem>>, vector<8x1xi32>
    tpu.vector_store %arg4[%c0_9, %c0_10], %26 {strides = array<i32>} : memref<8x1xi32, #tpu.memory_space<vmem>>, vector<8x1xi32>,
    return
  }
  func.func @transform_0(%arg0: i32) -> (i32, i32) {
    %c0_i32 = arith.constant 0 : i32
    %c0_i32_0 = arith.constant 0 : i32
    %c0_i32_1 = arith.constant 0 : i32
    return %c0_i32, %c0_i32_0 : i32, i32
  }
  func.func @transform_1(%arg0: i32) -> (i32, i32) {
    %c0_i32 = arith.constant 0 : i32
    %c0_i32_0 = arith.constant 0 : i32
    %c0_i32_1 = arith.constant 0 : i32
    return %c0_i32, %c0_i32_0 : i32, i32
  }
  func.func @transform_2(%arg0: i32) -> (i32, i32) {
    %c0_i32 = arith.constant 0 : i32
    %c0_i32_0 = arith.constant 0 : i32
    %c0_i32_1 = arith.constant 0 : i32
    return %c0_i32, %c0_i32_0 : i32, i32
  }
  func.func @transform_3(%arg0: i32) -> (i32, i32) {
    %c0_i32 = arith.constant 0 : i32
    %c0_i32_0 = arith.constant 0 : i32
    %c0_i32_1 = arith.constant 0 : i32
    return %c0_i32, %c0_i32_0 : i32, i32
  }
}

</mosaic_0001>

<bundles_post_ra>
// kernel: tpu_custom_call.1
= control target key start
LH: loop header
LB: loop body
LE: loop exit
PB: predicated region body
PF: predicated region fallthrough
CT: control target
= control target key end

     0   :  { %vm12_vm0 = vcmask 31744   ;;  %v35_v2 = vlaneseq  ;;  %vm33_vm3 = vcmask 7168   ;;  %s110_s0 = inlined_call_operand.vmem [shape: f32[8,4], index: 0, kind: input, shape index: {}]   ;;  %s111_s1 = inlined_call_operand.vmem [shape: f32[8,4], index: 1, kind: output, shape index: {0}]   ;;  %s112_s3 = inlined_call_operand.vmem [shape: s32[8,1], index: 3, kind: output, shape index: {2}]   ;;  %s113_s2 = inlined_call_operand.vmem [shape: f32[8,1], index: 2, kind: output, shape index: {1}]  }
   0x1   :  { %v11_v0 = vld [vmem:[%s110_s0] sm:$0xff] }
   0x2   :  { %v13_v1 = vsel %vm12_vm0, %v11_v0, -inf  ;;  %v36_v3 = vand.u32 127, %v35_v2 }
   0x3   :  { %14 = vmax.xlane.f32.xlu0 %v13_v1 }
  0x90   :  { %v15_v4 = vpop.xlane.xlu0 %14 }
  0x91   :  { %v16_v5 = vsub.f32 %v11_v0, %v15_v4  ;;  %vm37_vm1 = vcmp.eq.f32.partialorder %v11_v0, %v15_v4 }
  0x92   :  { %v38_v6 = vsel %vm37_vm1, %v36_v3, 4 }
  0x93   :  { %v17_v7 = vmul.f32 1.442695, %v16_v5  ;;  %v39_v8 = vsel %vm12_vm0, %v38_v6, 2147483647 }
  0x94   :  { %v41_v9 = vshra.s32 %v39_v8, 16  ;;  %v40_v13 = vand.u32 65535, %v39_v8 }
  0x95   :  { %67 = vpow2.f32 %v17_v7 }
  0x96   :  { %v43_v10 = vcvt.s32.f32 %v41_v9  ;;  %v42_v15 = vcvt.s32.f32 %v40_v13 }
  0x98   :  { %44 = vmin.xlane.f32.xlu1 %v43_v10 }
  0x9f   :  { %v68_v11 = vpop.eup %67 }
  0xa0   :  { %v19_v12 = vsel %vm12_vm0, %v68_v11, 0.0 }
  0xa1   :  { %20 = vadd.xlane.f32.xlu0 %v19_v12 }
 0x125   :  { %v45_v14 = vpop.xlane.xlu1 %44 }
 0x126   :  { %vm46_vm2 = vcmp.eq.f32.partialorder %v43_v10, %v45_v14  ;;  %v51_v25 = vcvt.f32.s32 %v45_v14 }
 0x127   :  { %v47_v16 = vsel %vm46_vm2, %v42_v15, inf }
 0x128   :  { %48 = vmin.xlane.f32.xlu1 %v47_v16  ;;  %v52_v27 = vshll.u32 %v51_v25, 16 }
 0x12e   :  { %v21_v17 = vpop.xlane.xlu0 %20 }
 0x12f   :  { %69 = vrcp.f32 %v21_v17 }
 0x130   :  { %71 = vlog2.f32 %v21_v17 }
 0x139   :  { %v70_v18 = vpop.eup %69 }
 0x13a   :  { %v72_v19 = vpop.eup %71  ;;  %v23_v20 = vmul.f32 %v70_v18, %v68_v11 }
 0x13b   :  { %v25_v21 = vmul.f32 0.6931472, %v72_v19 }
 0x13c   :  { %27 = vst.msk [vmem:[%s111_s1] sm:$0xff] %vm12_vm0, %v23_v20 }
 0x13d   :  { %v26_v22 = vsub.f32 %v16_v5, %v25_v21 }
 0x13f   :  { %v28_v23 = vmul.f32 %v26_v22, %v23_v20 }
 0x141   :  { %v29_v24 = vsel %vm12_vm0, %v28_v23, 0.0 }
 0x142   :  { %30 = vadd.xlane.f32.xlu0 %v29_v24 }
 0x1b5   :  { %v49_v26 = vpop.xlane.xlu1 %48 }
 0x1b6   :  { %v50_v28 = vcvt.f32.s32 %v49_v26 }
 0x1b8   :  { %v53_v29 = vadd.s32 %v52_v27, %v50_v28 }
 0x1ba   :  { %54 = vst.msk [vmem:[%s112_s3] sm:$0xff] %vm33_vm3, %v53_v29 }
 0x1cf   :  { %v31_v30 = vpop.xlane.xlu0 %30 }
 0x1d0   :  { %v32_v31 = vsub.f32 0.0, %v31_v30 }
 0x1d2   :  { %34 = vst.msk [vmem:[%s113_s2] sm:$0xff] %vm33_vm3, %v32_v31 }

</bundles_post_ra>
